<compile_context>
chip_gen: v7x
topology: tpu7x:2x2x1
jax: 0.10.0
libtpu: 0.0.40
codegen_flags: <defaults>
</compile_context>

<pallas_src>
import functools

import jax
import jax.numpy as jnp
from jax.experimental import pallas as pl
from jax.experimental.pallas import tpu as pltpu

EPS = 1e-6                       # matches torch F.pairwise_distance default eps
_LANE = 128
_SUBLANE = 8
_DEFAULT_BLOCK_BYTES = 2 * 1024 * 1024   # ~1-2 MiB knee; 2 inputs x 2 bufs = 8 MiB
_SMALL_BLOCK_BYTES = 512 * 1024          # below this, request 3-deep buffering
_MAX_UNROLLED_LANE_CHUNKS = 32


def _squared_diff(x0, x1, low_precision_diff):
    """(x0 - x1 + eps)^2 in f32.  EPS is always added in f32 (1e-6 would vanish
    under bf16 rounding of O(1) values)."""
    if low_precision_diff and x0.dtype != jnp.float32:
        diff = (x0 - x1).astype(jnp.float32) + EPS
    else:
        diff = x0.astype(jnp.float32) - x1.astype(jnp.float32) + EPS
    return diff * diff


def _contrastive_acc_kernel(x0_ref, x1_ref, lbl_ref, loss_ref, sq_acc_ref, *,
                            margin, low_precision_diff):
    """General path: grid=(B/tb, D/td); D (reduction) axis last / 'arbitrary'.

    x0_ref, x1_ref : (tb, td) input tiles (native dtype) in VMEM
    lbl_ref        : (tb, 1) f32 labels (block index constant along D -> resident)
    loss_ref       : (tb, 1) f32 per-row loss output (written at last D step)
    sq_acc_ref     : (tb, 128) f32 lane-partial running sum of squares
    """
    k = pl.program_id(1)

    @pl.when(k == 0)
    def _init():
        sq_acc_ref[...] = jnp.zeros_like(sq_acc_ref)

    sq = _squared_diff(x0_ref[...], x1_ref[...], low_precision_diff)
    td = sq.shape[1]
    n_chunks = td // _LANE
    if td % _LANE == 0 and 1 <= n_chunks <= _MAX_UNROLLED_LANE_CHUNKS:
        # Lane-aligned VPU adds; the cross-lane (XLU) reduce is deferred to
        # the finalize step.
        part = sq[:, 0:_LANE]
        for c in range(1, n_chunks):
            part = part + sq[:, c * _LANE:(c + 1) * _LANE]
        sq_acc_ref[...] += part
    else:
        # Many chunks (or ragged td): one reduce per step is already cheap
        # relative to the block's DMA; lanes 1..127 of the scratch stay zero.
        sq_acc_ref[:, 0:1] += jnp.sum(sq, axis=1, keepdims=True)

    @pl.when(k == pl.num_programs(1) - 1)
    def _finalize():
        row_sq = jnp.sum(sq_acc_ref[...], axis=1, keepdims=True)   # == dist**2
        dist = jnp.sqrt(row_sq)
        hinge = jnp.maximum(margin - dist, 0.0)
        lbl = lbl_ref[...]
        # Positive term uses the accumulated sum directly (no sqrt->square trip).
        loss_ref[...] = lbl * row_sq + (1.0 - lbl) * (hinge * hinge)


def _partial_sq_kernel(x0_ref, x1_ref, part_ref, *, low_precision_diff):
    """Small-batch path: each grid step owns one D chunk (fully parallel).

    x0_ref, x1_ref : (B, td) input tiles
    part_ref       : (1, B, 1) partial sum of squares for this D chunk
    """
    sq = _squared_diff(x0_ref[...], x1_ref[...], low_precision_diff)
    part_ref[0] = jnp.sum(sq, axis=1, keepdims=True)


def _pick_tile(dim, multiple, target):
    """Largest tile <= target that is a multiple of `multiple` and divides dim;
    falls back to the full dim (block == full array dim is always legal)."""
    t = min(target, dim)
    t -= t % multiple
    while t >= multiple:
        if dim % t == 0:
            return t
        t -= multiple
    return dim


def _input_spec(block_shape, index_map, extra_buffering):
    """BlockSpec with optional 3-deep multi-buffering (feature-detected)."""
    if extra_buffering and hasattr(pl, "Buffered"):
        try:
            return pl.BlockSpec(block_shape, index_map,
                                pipeline_mode=pl.Buffered(3))
        except TypeError:   # older jax without the pipeline_mode kwarg
            pass
    return pl.BlockSpec(block_shape, index_map)


def _compiler_params(dimension_semantics, vmem_estimate_bytes):
    kwargs = dict(dimension_semantics=dimension_semantics)
    if vmem_estimate_bytes > 14 * 1024 * 1024:
        # Rare fallback tiling (no nice divisor of D): raise the scoped-VMEM
        # limit, but never beyond what v7x's 64 MiB per-TC VMEM tolerates.
        kwargs["vmem_limit_bytes"] = int(min(vmem_estimate_bytes + (2 << 20),
                                             48 * 1024 * 1024))
    return pltpu.CompilerParams(**kwargs)


def contrastive_loss(out_vec_t0, out_vec_t1, label, margin=2.0,
                     max_block_bytes=_DEFAULT_BLOCK_BYTES,
                     low_precision_diff=False):
    """JAX/Pallas equivalent of ConstractiveLoss(margin, dist_flag='l2').forward."""
    # TODO(synk): dist_flag='l1' and 'cos' branches not implemented (module default is 'l2').
    B = out_vec_t0.shape[0]
    x0 = out_vec_t0.reshape(B, -1)          # view(B, -1); keep native dtype
    x1 = out_vec_t1.reshape(B, -1)
    D = x0.shape[1]
    itemsize = jnp.dtype(x0.dtype).itemsize

    # ---- joint (tb, td) tiling -------------------------------------------
    # tb first: when B >= 16, keep >= 2 blocks on the parallel axis (v7x has
    # two TensorCores); otherwise take the whole (small) batch per block.
    if B >= 2 * _SUBLANE:
        tb = _pick_tile(B, _SUBLANE, (B // 2) // _SUBLANE * _SUBLANE)
    else:
        tb = B
    # td from the byte budget so each input block sits near the ~1-2 MiB knee.
    if D * tb * itemsize <= max_block_bytes:
        td = D
    else:
        td_target = max(_LANE,
                        (max_block_bytes // (tb * itemsize)) // _LANE * _LANE)
        td = _pick_tile(D, _LANE, td_target)

    n_b = B // tb
    n_d = D // td

    block_bytes = tb * td * itemsize
    grid_steps = n_b * n_d
    extra_buffering = (block_bytes <= _SMALL_BLOCK_BYTES) and (grid_steps >= 3)
    bufs = 3 if extra_buffering else 2
    vmem_estimate = 2 * bufs * block_bytes + (tb * _LANE + 4 * tb) * 4

    lbl_col = label.reshape(B, 1).astype(jnp.float32)

    if n_b == 1 and n_d >= 2:
        # ---- small-batch path: D chunks fully parallel (both v7x cores) ----
        kernel = functools.partial(_partial_sq_kernel,
                                   low_precision_diff=low_precision_diff)
        partials = pl.pallas_call(
            kernel,
            out_shape=jax.ShapeDtypeStruct((n_d, B, 1), jnp.float32),
            grid_spec=pltpu.PrefetchScalarGridSpec(
                num_scalar_prefetch=0,
                grid=(n_d,),
                in_specs=[
                    _input_spec((B, td), lambda k: (0, k), extra_buffering),
                    _input_spec((B, td), lambda k: (0, k), extra_buffering),
                ],
                out_specs=pl.BlockSpec((1, B, 1), lambda k: (k, 0, 0)),
            ),
            compiler_params=_compiler_params(("parallel",), vmem_estimate),
        )(x0, x1)
        row_sq = jnp.sum(partials[:, :, 0], axis=0)          # (B,) == dist**2
        dist = jnp.sqrt(row_sq)
        hinge = jnp.maximum(margin - dist, 0.0)
        lbl = lbl_col[:, 0]
        per_row = lbl * row_sq + (1.0 - lbl) * (hinge * hinge)
        return jnp.sum(per_row) / B

    # ---- general path: B parallel, D reduction (P3 accumulator) ----
    kernel = functools.partial(_contrastive_acc_kernel, margin=float(margin),
                               low_precision_diff=low_precision_diff)
    per_row_loss = pl.pallas_call(
        kernel,
        out_shape=jax.ShapeDtypeStruct((B, 1), jnp.float32),
        grid_spec=pltpu.PrefetchScalarGridSpec(
            num_scalar_prefetch=0,
            grid=(n_b, n_d),
            in_specs=[
                _input_spec((tb, td), lambda i, k: (i, k), extra_buffering),
                _input_spec((tb, td), lambda i, k: (i, k), extra_buffering),
                # Label block index constant along D -> stays resident in VMEM.
                pl.BlockSpec((tb, 1), lambda i, k: (i, 0)),
            ],
            out_specs=pl.BlockSpec((tb, 1), lambda i, k: (i, 0)),
            scratch_shapes=[pltpu.VMEM((tb, _LANE), jnp.float32)],
        ),
        compiler_params=_compiler_params(("parallel", "arbitrary"),
                                         vmem_estimate),
    )(x0, x1, lbl_col)
    return jnp.sum(per_row_loss) / B


def _reference(out_vec_t0, out_vec_t1, label, margin=2.0):
    B = out_vec_t0.shape[0]
    x0 = out_vec_t0.reshape(B, -1).astype(jnp.float32)
    x1 = out_vec_t1.reshape(B, -1).astype(jnp.float32)
    d = jnp.sqrt(jnp.sum((x0 - x1 + EPS) ** 2, axis=1))
    lbl = label.reshape(B).astype(jnp.float32)
    loss = lbl * d ** 2 + (1.0 - lbl) * jnp.clip(margin - d, 0.0, None) ** 2
    return jnp.mean(loss)


if __name__ == "__main__":
    key = jax.random.PRNGKey(0)
    k0, k1, k2, k3, k4, k5 = jax.random.split(key, 6)

    # Test 1: f32 NCHW feature maps (B=2, C=4, 16x16 -> D=1024).  Joint tile
    # sizing collapses this to a single full-D block (grid (1,1)); x_t1 is
    # close to x_t0 so the hinge branch is active; labels cover both branches.
    B, C, H, W = 2, 4, 16, 16
    x_t0 = jax.random.normal(k0, (B, C, H, W), dtype=jnp.float32)
    x_t1 = x_t0 + 0.01 * jax.random.normal(k1, (B, C, H, W), dtype=jnp.float32)
    label = jnp.array([1.0, 0.0], dtype=jnp.float32)
    out = jax.block_until_ready(contrastive_loss(x_t0, x_t1, label))
    ref = _reference(x_t0, x_t1, label)
    assert jnp.allclose(out, ref, rtol=1e-5, atol=1e-5), (out, ref)

    # Test 2: bf16 inputs, larger D (8*32*32 = 8192).  Exercises the native-
    # dtype (no HBM pre-cast) path and the many-lane-chunk reduce fallback.
    y_t0 = jax.random.normal(k2, (2, 8, 32, 32), dtype=jnp.bfloat16)
    y_t1 = jax.random.normal(k3, (2, 8, 32, 32), dtype=jnp.bfloat16)
    label2 = jnp.array([0.0, 1.0], dtype=jnp.float32)
    out2 = jax.block_until_ready(contrastive_loss(y_t0, y_t1, label2))
    ref2 = _reference(y_t0, y_t1, label2)
    assert jnp.allclose(out2, ref2, rtol=1e-4, atol=1e-4), (out2, ref2)

    # Test 3: B=16 with an artificially small block budget to exercise the
    # multi-step accumulator path (grid (2,2): parallel B blocks, two D steps,
    # wide lane-partial accumulator, Buffered(3) inputs).
    z_t0 = jax.random.normal(k4, (16, 4, 16, 16), dtype=jnp.float32)
    z_t1 = z_t0 + 0.05 * jax.random.normal(k5, (16, 4, 16, 16), dtype=jnp.float32)
    label3 = (jnp.arange(16) % 2).astype(jnp.float32)
    out3 = jax.block_until_ready(
        contrastive_loss(z_t0, z_t1, label3, max_block_bytes=16 * 1024))
    ref3 = _reference(z_t0, z_t1, label3)
    assert jnp.allclose(out3, ref3, rtol=1e-5, atol=1e-5), (out3, ref3)

    # Test 4: tiny batch with an artificially small budget to exercise the
    # small-B / parallel-D partial-sum path (grid (4,), finalize in wrapper).
    out4 = jax.block_until_ready(
        contrastive_loss(x_t0, x_t1, label, max_block_bytes=2 * 1024))
    assert jnp.allclose(out4, ref, rtol=1e-5, atol=1e-5), (out4, ref)

    print("KERNEL_OK")
</pallas_src>

<mosaic_0001>
module attributes {stable_mosaic.version = 11 : i64} {
  func.func @_contrastive_acc_kernel(%arg0: i32, %arg1: i32, %arg2: memref<2x1024xf32, #tpu.memory_space<vmem>>, %arg3: memref<2x1024xf32, #tpu.memory_space<vmem>>, %arg4: memref<2x1xf32, #tpu.memory_space<vmem>>, %arg5: memref<2x1xf32, #tpu.memory_space<vmem>>, %arg6: memref<2x128xf32, #tpu.memory_space<vmem>>) attributes {dimension_semantics = [#tpu.dimension_semantics<parallel>, #tpu.dimension_semantics<arbitrary>], iteration_bounds = array<i64: 1, 1>, scalar_prefetch = 0 : i64, scratch_operands = 1 : i64, tpu.core_type = #tpu.core_type<tc>, window_params = [{transform_indices = @transform_0, window_bounds = array<i64: 2, 1024>}, {transform_indices = @transform_1, window_bounds = array<i64: 2, 1024>}, {transform_indices = @transform_2, window_bounds = array<i64: 2, 1>}, {transform_indices = @transform_3, window_bounds = array<i64: 2, 1>}]} {
    %c0_i32 = arith.constant 0 : i32
    %0 = arith.cmpi eq, %arg1, %c0_i32 : i32
    %1 = arith.extui %0 : i1 to i32
    %c0_i32_0 = arith.constant 0 : i32
    %2 = arith.cmpi ne, %1, %c0_i32_0 : i32
    scf.if %2 {
      %cst_10 = arith.constant 0.000000e+00 : f32
      %30 = vector.broadcast %cst_10 : f32 to vector<2x128xf32>
      %c0_11 = arith.constant 0 : index
      %c0_12 = arith.constant 0 : index
      %31 = vector.load %arg6[%c0_11, %c0_12] : memref<2x128xf32, #tpu.memory_space<vmem>>, vector<2x128xf32>
      tpu.vector_store %arg6[%c0_11, %c0_12], %30 {strides = array<i32>} : memref<2x128xf32, #tpu.memory_space<vmem>>, vector<2x128xf32>,
    } else {
    }
    %c0 = arith.constant 0 : index
    %c0_1 = arith.constant 0 : index
    %3 = vector.load %arg2[%c0, %c0_1] : memref<2x1024xf32, #tpu.memory_space<vmem>>, vector<2x1024xf32>
    %c0_2 = arith.constant 0 : index
    %c0_3 = arith.constant 0 : index
    %4 = vector.load %arg3[%c0_2, %c0_3] : memref<2x1024xf32, #tpu.memory_space<vmem>>, vector<2x1024xf32>
    %5 = arith.subf %3, %4 : vector<2x1024xf32>
    %cst = arith.constant 9.99999997E-7 : f32
    %6 = vector.broadcast %cst : f32 to vector<2x1024xf32>
    %7 = arith.addf %5, %6 : vector<2x1024xf32>
    %8 = arith.mulf %7, %7 : vector<2x1024xf32>
    %9 = vector.extract_strided_slice %8 {offsets = [0, 0], sizes = [2, 128], strides = [1, 1]} : vector<2x1024xf32> to vector<2x128xf32>
    %10 = vector.extract_strided_slice %8 {offsets = [0, 128], sizes = [2, 128], strides = [1, 1]} : vector<2x1024xf32> to vector<2x128xf32>
    %11 = arith.addf %9, %10 : vector<2x128xf32>
    %12 = vector.extract_strided_slice %8 {offsets = [0, 256], sizes = [2, 128], strides = [1, 1]} : vector<2x1024xf32> to vector<2x128xf32>
    %13 = arith.addf %11, %12 : vector<2x128xf32>
    %14 = vector.extract_strided_slice %8 {offsets = [0, 384], sizes = [2, 128], strides = [1, 1]} : vector<2x1024xf32> to vector<2x128xf32>
    %15 = arith.addf %13, %14 : vector<2x128xf32>
    %16 = vector.extract_strided_slice %8 {offsets = [0, 512], sizes = [2, 128], strides = [1, 1]} : vector<2x1024xf32> to vector<2x128xf32>
    %17 = arith.addf %15, %16 : vector<2x128xf32>
    %18 = vector.extract_strided_slice %8 {offsets = [0, 640], sizes = [2, 128], strides = [1, 1]} : vector<2x1024xf32> to vector<2x128xf32>
    %19 = arith.addf %17, %18 : vector<2x128xf32>
    %20 = vector.extract_strided_slice %8 {offsets = [0, 768], sizes = [2, 128], strides = [1, 1]} : vector<2x1024xf32> to vector<2x128xf32>
    %21 = arith.addf %19, %20 : vector<2x128xf32>
    %22 = vector.extract_strided_slice %8 {offsets = [0, 896], sizes = [2, 128], strides = [1, 1]} : vector<2x1024xf32> to vector<2x128xf32>
    %23 = arith.addf %21, %22 : vector<2x128xf32>
    %c0_4 = arith.constant 0 : index
    %c0_5 = arith.constant 0 : index
    %24 = vector.load %arg6[%c0_4, %c0_5] : memref<2x128xf32, #tpu.memory_space<vmem>>, vector<2x128xf32>
    %25 = arith.addf %24, %23 : vector<2x128xf32>
    %c0_6 = arith.constant 0 : index
    %c0_7 = arith.constant 0 : index
    %26 = vector.load %arg6[%c0_6, %c0_7] : memref<2x128xf32, #tpu.memory_space<vmem>>, vector<2x128xf32>
    tpu.vector_store %arg6[%c0_6, %c0_7], %25 {strides = array<i32>} : memref<2x128xf32, #tpu.memory_space<vmem>>, vector<2x128xf32>,
    %c0_i32_8 = arith.constant 0 : i32
    %27 = arith.cmpi eq, %arg1, %c0_i32_8 : i32
    %28 = arith.extui %27 : i1 to i32
    %c0_i32_9 = arith.constant 0 : i32
    %29 = arith.cmpi ne, %28, %c0_i32_9 : i32
    scf.if %29 {
      %c0_10 = arith.constant 0 : index
      %c0_11 = arith.constant 0 : index
      %30 = vector.load %arg6[%c0_10, %c0_11] : memref<2x128xf32, #tpu.memory_space<vmem>>, vector<2x128xf32>
      %cst_12 = arith.constant dense<0.000000e+00> : vector<2xf32>
      %31 = vector.multi_reduction <add>, %30, %cst_12 [1] : vector<2x128xf32> to vector<2xf32>
      %32 = vector.shape_cast %31 : vector<2xf32> to vector<2x1xf32>
      %33 = math.sqrt %32 : vector<2x1xf32>
      %cst_13 = arith.constant 2.000000e+00 : f32
      %34 = vector.broadcast %cst_13 : f32 to vector<2x1xf32>
      %35 = arith.subf %34, %33 : vector<2x1xf32>
      %cst_14 = arith.constant 0.000000e+00 : f32
      %36 = vector.broadcast %cst_14 : f32 to vector<2x1xf32>
      %37 = arith.maximumf %35, %36 : vector<2x1xf32>
      %c0_15 = arith.constant 0 : index
      %c0_16 = arith.constant 0 : index
      %38 = vector.load %arg4[%c0_15, %c0_16] : memref<2x1xf32, #tpu.memory_space<vmem>>, vector<2x1xf32>
      %39 = arith.mulf %38, %32 : vector<2x1xf32>
      %cst_17 = arith.constant 1.000000e+00 : f32
      %40 = vector.broadcast %cst_17 : f32 to vector<2x1xf32>
      %41 = arith.subf %40, %38 : vector<2x1xf32>
      %42 = arith.mulf %37, %37 : vector<2x1xf32>
      %43 = arith.mulf %41, %42 : vector<2x1xf32>
      %44 = arith.addf %39, %43 : vector<2x1xf32>
      %c0_18 = arith.constant 0 : index
      %c0_19 = arith.constant 0 : index
      %45 = vector.load %arg5[%c0_18, %c0_19] : memref<2x1xf32, #tpu.memory_space<vmem>>, vector<2x1xf32>
      tpu.vector_store %arg5[%c0_18, %c0_19], %44 {strides = array<i32>} : memref<2x1xf32, #tpu.memory_space<vmem>>, vector<2x1xf32>,
    } else {
    }
    return
  }
  func.func @transform_0(%arg0: i32, %arg1: i32) -> (i32, i32) {
    %c0_i32 = arith.constant 0 : i32
    return %arg0, %arg1 : i32, i32
  }
  func.func @transform_1(%arg0: i32, %arg1: i32) -> (i32, i32) {
    %c0_i32 = arith.constant 0 : i32
    return %arg0, %arg1 : i32, i32
  }
  func.func @transform_2(%arg0: i32, %arg1: i32) -> (i32, i32) {
    %c0_i32 = arith.constant 0 : i32
    %c0_i32_0 = arith.constant 0 : i32
    return %arg0, %c0_i32 : i32, i32
  }
  func.func @transform_3(%arg0: i32, %arg1: i32) -> (i32, i32) {
    %c0_i32 = arith.constant 0 : i32
    %c0_i32_0 = arith.constant 0 : i32
    return %arg0, %c0_i32 : i32, i32
  }
}

</mosaic_0001>

<bundles_post_ra>
// kernel: tpu_custom_call.1
= control target key start
LH: loop header
LB: loop body
LE: loop exit
PB: predicated region body
PF: predicated region fallthrough
CT: control target
= control target key end

     0   :  { %8 = vsyncpa [#allocation4], 0  ;;  %s214_s0 = inlined_call_operand.hbm [shape: f32[2,1024], index: 0, kind: input, shape index: {}]   ;;  %s215_s1 = inlined_call_operand.hbm [shape: f32[2,1024], index: 1, kind: input, shape index: {}]   ;;  %s216_s2 = inlined_call_operand.vmem [shape: f32[2,1], index: 2, kind: input, shape index: {}]   ;;  %s217_s3 = inlined_call_operand.vmem [shape: f32[2,1], index: 3, kind: output, shape index: {}]  }
   0x1   :  { %9 = vsyncpa [#allocation6], 0  ;;  %s161_s12 = smov [#allocation3]   ;;  %s162_s14 = smov [#allocation5]  }
   0x2   :  { %s16_s13 = sshll.u32 %s161_s12, 4  ;;  %s26_s15 = sshll.u32 %s162_s14, 4  ;;  %s17_s13 = int_to_ptr.vmem [resolvable:$true] %s16_s13  ;;  %s27_s15 = int_to_ptr.vmem [resolvable:$true] %s26_s15 }
   0x3   :  { %s113_s18 = scalar_lea.hbm %s214_s0, 256 }
   0x4   :  { %p114_p0 = scmp.ne.s32.totalorder %s214_s0, %s113_s18  ;;  %p117_p1 = scmp.lt.u32.totalorder %s113_s18, %s214_s0 }
   0x6   :  { %p119_p2 = pnand %p117_p1, %p114_p0 }
   0x8   :  { %122 = shalt.err (!%p119_p2)
}
   0x9   :  { %s123_s23 = scalar_lea.vmem %s17_s13, 256  ;;  %p128_p4 = scmp.lt.s32.totalorder %s17_s13, %s17_s13 }
   0xa   :  { %p124_p3 = scmp.ne.s32.totalorder %s17_s13, %s123_s23  ;;  %p129_p5 = scmp.lt.s32.totalorder %s123_s23, %s123_s23 }
   0xc   :  { %p130_p6 = por %p129_p5, %p128_p4 }
   0xe   :  { %p131_p7 = pnand %p130_p6, %p124_p3 }
  0x10   :  { %134 = shalt.err (!%p131_p7)
}
  0x11   :  { %19 = dma.hbm_to_vmem [thread:$0]  %s214_s0, 256, %s17_s13, [#allocation4]  }
  0x12   :  { %s135_s28 = scalar_lea.hbm %s215_s1, 256 }
  0x13   :  { %p136_p8 = scmp.ne.s32.totalorder %s215_s1, %s135_s28  ;;  %p139_p9 = scmp.lt.u32.totalorder %s135_s28, %s215_s1 }
  0x15   :  { %p141_p10 = pnand %p139_p9, %p136_p8 }
  0x17   :  { %144 = shalt.err (!%p141_p10)
}
  0x18   :  { %s145_s6 = scalar_lea.vmem %s27_s15, 256  ;;  %p150_p12 = scmp.lt.s32.totalorder %s27_s15, %s27_s15 }
  0x19   :  { %p146_p11 = scmp.ne.s32.totalorder %s27_s15, %s145_s6  ;;  %p151_p13 = scmp.lt.s32.totalorder %s145_s6, %s145_s6 }
  0x1b   :  { %p152_p0 = por %p151_p13, %p150_p12 }
  0x1d   :  { %p153_p1 = pnand %p152_p0, %p146_p11 }
  0x1f   :  { %156 = shalt.err (!%p153_p1)
}
  0x20   :  { %29 = dma.hbm_to_vmem [thread:$0]  %s215_s1, 256, %s27_s15, [#allocation6]  }
  0x21   :  { %157 = dma.done.wait [#allocation4], 256  }
  0x22   :  { %158 = vsyncadd [#allocation4], 4294967040 }
  0x23   :  { %159 = dma.done.wait [#allocation6], 256  }
  0x24   :  { %160 = vsyncadd [#allocation6], 4294967040  ;;  %v163_v0 = vmov 0.0   ;;  %v43_v1 = vld [vmem:[#allocation3] sm:$0xff]  ;;  %v44_v2 = vld [vmem:[#allocation3 + $0x8] sm:$0xff]  ;;  %vm81_vm0 = vcmask 1041408  }
  0x25   :  { %42 = vst [vmem:[#allocation2] sm:$0x3] %v163_v0  ;;  %v45_v3 = vld [vmem:[#allocation5] sm:$0xff]  ;;  %v46_v4 = vld [vmem:[#allocation5 + $0x8] sm:$0xff]  ;;  %vm100_vm3 = vcmask 1024  }
  0x26   :  { %v47_v5 = vsub.f32 %v43_v1, %v45_v3  ;;  %v48_v6 = vsub.f32 %v44_v2, %v46_v4  ;;  %v94_v35 = vld [vmem:[%s216_s2] sm:$0x3] }
  0x27   :  { %v96_v37 = vsub.f32 1.0, %v94_v35 }
  0x28   :  { %v49_v7 = vadd.f32 1e-06, %v47_v5  ;;  %v50_v8 = vadd.f32 1e-06, %v48_v6 }
  0x2a   :  { %v51_v9 = vmul.f32 %v49_v7, %v49_v7  ;;  %v52_v12 = vmul.f32 %v50_v8, %v50_v8 }
  0x2c   :  { %v54_v10 = vrot.slane %v51_v9, 2  ;;  %v57_v11 = vrot.slane %v51_v9, 4  ;;  %v60_v14 = vrot.slane %v51_v9, 6  ;;  %v65_v17 = vrot.slane %v52_v12, 2  ;;  %v74_v23 = vld [vmem:[#allocation2] sm:$0x3] }
  0x2d   :  { %v68_v19 = vrot.slane %v52_v12, 4  ;;  %v71_v21 = vrot.slane %v52_v12, 6 }
  0x2e   :  { %v56_v13 = vadd.f32 %v54_v10, %v51_v9 }
  0x30   :  { %v59_v15 = vadd.f32 %v57_v11, %v56_v13 }
  0x32   :  { %v62_v16 = vadd.f32 %v60_v14, %v59_v15 }
  0x34   :  { %v63_v18 = vadd.f32 %v62_v16, %v52_v12 }
  0x36   :  { %v67_v20 = vadd.f32 %v65_v17, %v63_v18 }
  0x38   :  { %v70_v22 = vadd.f32 %v68_v19, %v67_v20 }
  0x3a   :  { %v73_v24 = vadd.f32 %v71_v21, %v70_v22 }
  0x3c   :  { %v75_v25 = vadd.f32 %v74_v23, %v73_v24 }
  0x3e   :  { %76 = vst [vmem:[#allocation2] sm:$0x3] %v75_v25 }
  0x45   :  { %v80_v26 = vld [vmem:[#allocation2] sm:$0x3] }
  0x46   :  { %v82_v27 = vsel %vm81_vm0, %v80_v26, 0.0 }
  0x47   :  { %83 = vadd.xlane.f32.xlu0 %v82_v27 }
  0xd4   :  { %v84_v28 = vpop.xlane.xlu0 %83 }
  0xd5   :  { %111 = vrsqrt.f32 %v84_v28  ;;  %vm87_vm1 = vcmp.eq.f32.partialorder %v84_v28, inf  ;;  %v90_v31 = vand.u32 2147483648, %v84_v28  ;;  %vm89_vm2 = vcmp.eq.f32.partialorder %v84_v28, 0.0 }
  0xd6   :  { %v95_v39 = vmul.f32 %v94_v35, %v84_v28 }
  0xdf   :  { %v112_v29 = vpop.eup %111 }
  0xe0   :  { %v86_v30 = vmul.f32 %v112_v29, %v84_v28 }
  0xe2   :  { %v88_v32 = vsel %vm87_vm1, %v84_v28, %v86_v30 }
  0xe3   :  { %v91_v33 = vsel %vm89_vm2, %v90_v31, %v88_v32 }
  0xe4   :  { %v92_v34 = vsub.f32 2.0, %v91_v33 }
  0xe6   :  { %v93_v36 = vmax.f32 %v92_v34, 0.0 }
  0xe8   :  { %v97_v38 = vmul.f32 %v93_v36, %v93_v36 }
  0xea   :  { %v98_v40 = vmul.f32 %v97_v38, %v96_v37 }
  0xec   :  { %v99_v41 = vadd.f32 %v98_v40, %v95_v39 }
  0xee   :  { %101 = vst.msk [vmem:[%s217_s3] sm:$0x3] %vm100_vm3, %v99_v41 }
  0xef   :  { %106 = vsyncpa [#allocation4], 1 }
  0xf0   :  { %107 = vsyncpa [#allocation6], 1 }

</bundles_post_ra>
